<compile_context>
chip_gen: v7x
topology: tpu7x:2x2x1
jax: 0.10.0
libtpu: 0.0.40
codegen_flags: <defaults>
</compile_context>

<pallas_src>
import math

import numpy as np

import jax
import jax.numpy as jnp
from jax.experimental import pallas as pl
from jax.experimental.pallas import tpu as pltpu


def _round_up(v, m):
    return ((v + m - 1) // m) * m


def _sublane(dtype):
    # Sublane packing: 8 rows for 4-byte, 16 for 2-byte, 32 for 1-byte dtypes.
    return {4: 8, 2: 16, 1: 32}.get(jnp.dtype(dtype).itemsize, 8)


def _vmem_capacity_bytes():
    try:
        return int(pltpu.get_tpu_info().vmem_capacity_bytes)
    except Exception:
        return 64 * 2**20  # conservative (v7x-sized) fallback


def _lora_kernel(scale_ref, x_ref, wa_ref, wb_ref, o_ref, xa_ref):
    # Compute the rank-sized intermediate once per batch tile (first out tile)
    # and keep it in a tiny f32 VMEM scratch; reuse it for every out_dim tile.
    @pl.when(pl.program_id(1) == 0)
    def _():
        xa = jnp.dot(x_ref[...], wa_ref[...], preferred_element_type=jnp.float32)
        # Apply scale to the (tm, rank) intermediate, not the wide output.
        xa_ref[...] = xa * scale_ref[0, 0]

    out = jnp.dot(xa_ref[...].astype(wb_ref.dtype), wb_ref[...],
                  preferred_element_type=jnp.float32)
    o_ref[...] = out.astype(o_ref.dtype)


def lora_forward(x, w_a, w_b, scale, *, block_batch=None, block_out=512):
    """scale * (x @ W_a @ W_b) with a batch/out_dim-tiled pipelined Pallas kernel.

    x: [..., in_dim], W_a: [in_dim, rank], W_b: [rank, out_dim].
    """
    orig_shape = x.shape
    in_dim = orig_shape[-1]
    x2 = x.reshape(-1, in_dim)
    batch = x2.shape[0]
    in_dim2, rank = w_a.shape
    rank2, out_dim = w_b.shape
    assert in_dim == in_dim2 and rank == rank2

    out_dtype = x2.dtype
    x_item = jnp.dtype(x2.dtype).itemsize
    out_item = jnp.dtype(out_dtype).itemsize
    wa_item = jnp.dtype(w_a.dtype).itemsize
    wb_item = jnp.dtype(w_b.dtype).itemsize

    # Lane-dense output: pad out_dim (via a tiny W_b pad) to a multiple of 128.
    out_dim_p = _round_up(out_dim, 128)
    if out_dim_p != out_dim:
        w_b = jnp.pad(w_b, ((0, 0), (0, out_dim_p - out_dim)))

    # --- generation-aware VMEM budget --------------------------------------
    vmem_cap = _vmem_capacity_bytes()
    budget = max(16 * 2**20, min(int(0.75 * vmem_cap), vmem_cap - (8 << 20)))
    if block_batch is None:
        block_batch = 1024 if vmem_cap >= (96 << 20) else 512  # v5e/v6e vs v7x

    # --- tile selection ------------------------------------------------------
    sub = _sublane(x2.dtype)
    tn = min(out_dim_p, max(128, _round_up(block_out, 128)))
    if batch > sub:
        # >= 2 batch grid steps when batch allows (v7x has 2 TensorCores).
        tm = _round_up(pl.cdiv(batch, 2), sub)
    else:
        tm = _round_up(max(batch, 1), sub)
    tm = max(sub, min(tm, _round_up(block_batch, sub)))

    def _usage(tm_, tn_):
        tiles = 2 * tm_ * (in_dim * x_item + tn_ * out_item)          # double-buffered x/out
        weights = 2 * (in_dim * rank * wa_item + rank * tn_ * wb_item)  # (conservative 2x)
        return tiles + weights + tm_ * rank * 4                        # + f32 scratch

    while _usage(tm, tn) > budget and tm > sub:
        tm = max(sub, _round_up(tm // 2, sub))
    while _usage(tm, tn) > budget and tn > 128:
        tn = max(128, _round_up(tn // 2, 128))

    grid = (pl.cdiv(batch, tm), pl.cdiv(out_dim_p, tn))
    vmem_limit = int(min(budget, max(32 * 2**20, 2 * _usage(tm, tn))))

    cost = pl.CostEstimate(
        flops=2 * batch * rank * (in_dim + out_dim_p),
        transcendentals=0,
        bytes_accessed=(batch * (in_dim * x_item + out_dim_p * out_item)
                        + in_dim * rank * wa_item + rank * out_dim_p * wb_item),
    )

    scale_arr = jnp.asarray(scale, dtype=jnp.float32).reshape(1, 1)

    out = pl.pallas_call(
        _lora_kernel,
        out_shape=jax.ShapeDtypeStruct((batch, out_dim_p), out_dtype),
        grid_spec=pltpu.PrefetchScalarGridSpec(
            num_scalar_prefetch=0,
            grid=grid,
            in_specs=[
                # scale: tiny runtime scalar, lives in SMEM, untiled.
                pl.BlockSpec(memory_space=pltpu.MemorySpace.SMEM),
                # x: one batch tile per i (pipelined); constant over j -> fetched once per i.
                pl.BlockSpec((tm, in_dim), lambda i, j: (i, 0)),
                # W_a: constant block index -> stays resident in VMEM.
                pl.BlockSpec((in_dim, rank), lambda i, j: (0, 0)),
                # W_b: one out_dim tile per j.
                pl.BlockSpec((rank, tn), lambda i, j: (0, j)),
            ],
            out_specs=pl.BlockSpec((tm, tn), lambda i, j: (i, j)),
            scratch_shapes=[pltpu.VMEM((tm, rank), jnp.float32)],
        ),
        compiler_params=pltpu.CompilerParams(
            # batch axis parallel (megacore on v7x); out axis "arbitrary" so the
            # j == 0 scratch init always precedes the j > 0 reuse on each core.
            dimension_semantics=("parallel", "arbitrary"),
            vmem_limit_bytes=vmem_limit,
        ),
        cost_estimate=cost,
    )(scale_arr, x2, w_a, w_b)

    if out_dim_p != out_dim:
        out = out[:, :out_dim]
    return out.reshape(orig_shape[:-1] + (out_dim,))


if __name__ == "__main__":
    key = jax.random.PRNGKey(0)
    k1, k2, k3, k4, k5, k6, k7, k8 = jax.random.split(key, 8)

    alpha = 16.0

    # ---- Case 1: faithful module init (W_b == 0) -> all-zero output. -------
    batch, in_dim, rank, out_dim = 8, 32, 8, 32
    scale = alpha / rank
    x = jax.random.normal(k1, (batch, in_dim), dtype=jnp.float32)
    # W_a ~ kaiming_uniform_(a=sqrt(5)); PyTorch 2D fan_in = size(1) = rank.
    bound = math.sqrt(2.0 / (1.0 + 5.0)) * math.sqrt(3.0 / rank)
    w_a = jax.random.uniform(k2, (in_dim, rank), jnp.float32, -bound, bound)
    w_b0 = jnp.zeros((rank, out_dim), jnp.float32)
    out1 = jax.block_until_ready(lora_forward(x, w_a, w_b0, scale))
    assert out1.shape == (batch, out_dim)
    assert bool(jnp.allclose(out1, 0.0))

    # ---- Case 2: random W_b, 3-D input (leading dims flattened). -----------
    x3d = jax.random.normal(k3, (2, 4, in_dim), dtype=jnp.float32)
    w_b = jax.random.normal(k4, (rank, out_dim), jnp.float32) * 0.05
    out2 = jax.block_until_ready(lora_forward(x3d, w_a, w_b, scale))
    ref2 = scale * (np.asarray(x3d, np.float64)
                    @ np.asarray(w_a, np.float64)
                    @ np.asarray(w_b, np.float64))
    assert out2.shape == (2, 4, out_dim)
    assert bool(np.allclose(np.asarray(out2, np.float64), ref2, atol=1e-2, rtol=1e-2))

    # ---- Case 3: ragged batch + tiled out_dim (2 batch tiles, 2 out tiles). -
    b3, i3, r3, o3 = 20, 128, 8, 256
    x3 = jax.random.normal(k5, (b3, i3), dtype=jnp.float32)
    w_a3 = jax.random.uniform(k6, (i3, r3), jnp.float32, -0.1, 0.1)
    w_b3 = jax.random.normal(k7, (r3, o3), jnp.float32) * 0.05
    out3 = jax.block_until_ready(lora_forward(x3, w_a3, w_b3, scale, block_out=128))
    ref3 = scale * (np.asarray(x3, np.float64)
                    @ np.asarray(w_a3, np.float64)
                    @ np.asarray(w_b3, np.float64))
    assert out3.shape == (b3, o3)
    assert bool(np.allclose(np.asarray(out3, np.float64), ref3, atol=1e-2, rtol=1e-2))

    # ---- Case 4: bf16 streaming (half the HBM traffic), f32 accumulate. ----
    b4, i4, r4, o4 = 32, 64, 8, 128
    x4 = jax.random.normal(k8, (b4, i4), dtype=jnp.float32).astype(jnp.bfloat16)
    w_a4 = jax.random.uniform(k2, (i4, r4), jnp.float32, -0.2, 0.2).astype(jnp.bfloat16)
    w_b4 = (jax.random.normal(k4, (r4, o4), jnp.float32) * 0.05).astype(jnp.bfloat16)
    out4 = jax.block_until_ready(lora_forward(x4, w_a4, w_b4, scale))
    ref4 = scale * (np.asarray(x4, np.float64)
                    @ np.asarray(w_a4, np.float64)
                    @ np.asarray(w_b4, np.float64))
    assert out4.dtype == jnp.bfloat16
    assert bool(np.allclose(np.asarray(out4.astype(jnp.float32), np.float64), ref4,
                            atol=6e-2, rtol=6e-2))

    print("KERNEL_OK")
</pallas_src>

<mosaic_0001>
module attributes {stable_mosaic.version = 11 : i64} {
  func.func @_lora_kernel(%arg0: i32, %arg1: i32, %arg2: memref<1x1xf32, #tpu.memory_space<smem>>, %arg3: memref<8x32xf32, #tpu.memory_space<vmem>>, %arg4: memref<32x8xf32, #tpu.memory_space<vmem>>, %arg5: memref<8x128xf32, #tpu.memory_space<vmem>>, %arg6: memref<8x128xf32, #tpu.memory_space<vmem>>, %arg7: memref<8x8xf32, #tpu.memory_space<vmem>>) attributes {dimension_semantics = [#tpu.dimension_semantics<parallel>, #tpu.dimension_semantics<arbitrary>], iteration_bounds = array<i64: 1, 1>, scalar_prefetch = 0 : i64, scratch_operands = 1 : i64, tpu.core_type = #tpu.core_type<tc>, window_params = [{transform_indices = @transform_0, window_bounds = array<i64: 1, 1>}, {transform_indices = @transform_1, window_bounds = array<i64: 8, 32>}, {pipeline_mode = #tpu.pipeline_mode<synchronous>, transform_indices = @transform_2, window_bounds = array<i64: 32, 8>}, {transform_indices = @transform_3, window_bounds = array<i64: 8, 128>}, {transform_indices = @transform_4, window_bounds = array<i64: 8, 128>}]} {
    %c0_i32 = arith.constant 0 : i32
    %0 = arith.cmpi eq, %arg1, %c0_i32 : i32
    %1 = arith.extui %0 : i1 to i32
    %c0_i32_0 = arith.constant 0 : i32
    %2 = arith.cmpi ne, %1, %c0_i32_0 : i32
    scf.if %2 {
      %c0_6 = arith.constant 0 : index
      %c0_7 = arith.constant 0 : index
      %7 = vector.load %arg3[%c0_6, %c0_7] : memref<8x32xf32, #tpu.memory_space<vmem>>, vector<8x32xf32>
      %c0_8 = arith.constant 0 : index
      %c0_9 = arith.constant 0 : index
      %8 = vector.load %arg4[%c0_8, %c0_9] : memref<32x8xf32, #tpu.memory_space<vmem>>, vector<32x8xf32>
      %cst_10 = arith.constant dense<0.000000e+00> : vector<8x8xf32>
      %9 = tpu.matmul %7, %8, %cst_10 {dimension_numbers = #tpu.dot_dimension_numbers<[1], [0], [0], [1], [0, 0, 1, 1], [], []>} : vector<8x32xf32>, vector<32x8xf32>, vector<8x8xf32> -> vector<8x8xf32>
      %c0_11 = arith.constant 0 : index
      %c0_12 = arith.constant 0 : index
      %10 = memref.load %arg2[%c0_11, %c0_12] : memref<1x1xf32, #tpu.memory_space<smem>>
      %11 = vector.broadcast %10 : f32 to vector<8x8xf32>
      %12 = arith.mulf %9, %11 : vector<8x8xf32>
      %c0_13 = arith.constant 0 : index
      %c0_14 = arith.constant 0 : index
      %13 = vector.load %arg7[%c0_13, %c0_14] : memref<8x8xf32, #tpu.memory_space<vmem>>, vector<8x8xf32>
      tpu.vector_store %arg7[%c0_13, %c0_14], %12 {strides = array<i32>} : memref<8x8xf32, #tpu.memory_space<vmem>>, vector<8x8xf32>,
    } else {
    }
    %c0 = arith.constant 0 : index
    %c0_1 = arith.constant 0 : index
    %3 = vector.load %arg7[%c0, %c0_1] : memref<8x8xf32, #tpu.memory_space<vmem>>, vector<8x8xf32>
    %c0_2 = arith.constant 0 : index
    %c0_3 = arith.constant 0 : index
    %4 = vector.load %arg5[%c0_2, %c0_3] : memref<8x128xf32, #tpu.memory_space<vmem>>, vector<8x128xf32>
    %cst = arith.constant dense<0.000000e+00> : vector<8x128xf32>
    %5 = tpu.matmul %3, %4, %cst {dimension_numbers = #tpu.dot_dimension_numbers<[1], [0], [0], [1], [0, 0, 1, 1], [], []>} : vector<8x8xf32>, vector<8x128xf32>, vector<8x128xf32> -> vector<8x128xf32>
    %c0_4 = arith.constant 0 : index
    %c0_5 = arith.constant 0 : index
    %6 = vector.load %arg6[%c0_4, %c0_5] : memref<8x128xf32, #tpu.memory_space<vmem>>, vector<8x128xf32>
    tpu.vector_store %arg6[%c0_4, %c0_5], %5 {strides = array<i32>} : memref<8x128xf32, #tpu.memory_space<vmem>>, vector<8x128xf32>,
    return
  }
  func.func @transform_0(%arg0: i32, %arg1: i32) -> (i32, i32) {
    %c0_i32 = arith.constant 0 : i32
    %c0_i32_0 = arith.constant 0 : i32
    %c0_i32_1 = arith.constant 0 : i32
    return %c0_i32, %c0_i32_0 : i32, i32
  }
  func.func @transform_1(%arg0: i32, %arg1: i32) -> (i32, i32) {
    %c0_i32 = arith.constant 0 : i32
    %c0_i32_0 = arith.constant 0 : i32
    return %arg0, %c0_i32 : i32, i32
  }
  func.func @transform_2(%arg0: i32, %arg1: i32) -> (i32, i32) {
    %c0_i32 = arith.constant 0 : i32
    %c0_i32_0 = arith.constant 0 : i32
    %c0_i32_1 = arith.constant 0 : i32
    return %c0_i32, %c0_i32_0 : i32, i32
  }
  func.func @transform_3(%arg0: i32, %arg1: i32) -> (i32, i32) {
    %c0_i32 = arith.constant 0 : i32
    %c0_i32_0 = arith.constant 0 : i32
    return %c0_i32, %arg1 : i32, i32
  }
  func.func @transform_4(%arg0: i32, %arg1: i32) -> (i32, i32) {
    %c0_i32 = arith.constant 0 : i32
    return %arg0, %arg1 : i32, i32
  }
}

</mosaic_0001>

<bundles_post_ra>
// kernel: tpu_custom_call.1
= control target key start
LH: loop header
LB: loop body
LE: loop exit
PB: predicated region body
PF: predicated region fallthrough
CT: control target
= control target key end

     0   :  { %v257_v3 = vmov 0.0|0.0   ;;  %vm258_vm0 = vmmov 0   ;;  %v259_v6 = vmov 0.0   ;;  %s319_s0 = inlined_call_operand.<no memory space> [shape: f32[1,1], index: 0, kind: input, shape index: {}]   ;;  %s320_s1 = inlined_call_operand.vmem [shape: f32[8,32], index: 1, kind: input, shape index: {}]   ;;  %s321_s2 = inlined_call_operand.vmem [shape: f32[32,8], index: 2, kind: input, shape index: {}]   ;;  %s322_s3 = inlined_call_operand.vmem [shape: f32[8,128], index: 3, kind: input, shape index: {}]   ;;  %s323_s4 = inlined_call_operand.hbm [shape: f32[8,128], index: 4, kind: output, shape index: {}]  }
   0x1   :  { %v24_v0 = vld [vmem:[%s321_s2] sm:$0xff]  ;;  %v25_v1 = vld [vmem:[%s321_s2 + $0x8] sm:$0xff]  ;;  %v26_v2 = vld [vmem:[%s321_s2 + $0x10] sm:$0xff]  ;;  %223 = vmatprep.subr.bf16.mxu0 %v257_v3  ;;  %215 = vmatprep.mubr.msk.f32.mxu0 %vm258_vm0, %v259_v6 }
   0x2   :  { %v224_v4 = vpack.c.bf16 %v25_v1, %v24_v0  ;;  %v27_v5 = vld [vmem:[%s321_s2 + $0x18] sm:$0xff] }
   0x3   :  { %10 = vsyncpa [#allocation5], 0  ;;  %218 = vmatprep.subr.mxu1 %v259_v6  ;;  %220 = vmatprep.mubr.msk.f32.mxu1 %vm258_vm0, %v259_v6  ;;  %v227_v7 = vpack.c.bf16 %v27_v5, %v26_v2  ;;  %v23_v8 = vld [vmem:[%s320_s1] sm:$0xff]  ;;  %vm28_vm1 = vcmask 261120   ;;  %v103_v10 = vstv %s319_s0  ;;  %vm105_vm2 = vcmask 64512   ;;  %s260_s28 = smov [#allocation4]  }
   0x4   :  { %225 = vmatpush3.bf16.msra.mxu0 %v224_v4  ;;  %v108_v9 = vld [vmem:[%s322_s3] sm:$0xff]  ;;  %s190_s1 = sshll.u32 %s260_s28, 4  ;;  %s191_s1 = int_to_ptr.vmem [resolvable:$true] %s190_s1 }
   0x5   :  { %226 = vmatprep.subr.bf16.mxu0 %v257_v3  ;;  %219 = vmatpush3.msra.mxu1 %v108_v9  ;;  %s233_s29 = scalar_lea.vmem %s191_s1, 128  ;;  %p238_p1 = scmp.lt.s32.totalorder %s191_s1, %s191_s1 }
   0x6   :  { %p234_p0 = scmp.ne.s32.totalorder %s191_s1, %s233_s29  ;;  %p239_p2 = scmp.lt.s32.totalorder %s233_s29, %s233_s29 }
   0x8   :  { %228 = vmatpush3.bf16.msra.mxu0 %v227_v7  ;;  %p240_p3 = por %p239_p2, %p238_p1 }
   0xa   :  { %p241_p4 = pnand %p240_p3, %p234_p0 }
   0xb   :  { %216 = vmatmul.mubr.msk.f32.vlgmr.msra.gmra.mrb[0].mxu0 %vm28_vm1, %v23_v8 }
  0xde   :  { %v98_v11 = vpop.f32.mrb[0].mxu0 }
  0xdf   :  { %v104_v12 = vmul.f32 %v103_v10, %v98_v11  ;;  %v217_v13 = vpop.f32.mrb[1].mxu0 }
  0xe1   :  { %106 = vst.msk [vmem:[#allocation2] sm:$0xff] %vm105_vm2, %v104_v12 }
  0xe8   :  { %v107_v14 = vld [vmem:[#allocation2] sm:$0xff] }
  0xe9   :  { %221 = vmatmul.mubr.msk.f32.vlgmr.msra.gmra.mrb[0].mxu1 %vm105_vm2, %v107_v14 }
 0x1bc   :  { %v179_v15 = vpop.f32.mrb[0].mxu1 }
 0x1bd   :  { %183 = vst [vmem:[#allocation4] sm:$0xff] %v179_v15  ;;  %v222_v16 = vpop.f32.mrb[1].mxu1 }
 0x1be   :  { %244 = shalt.err (!%p241_p4)
}
 0x1bf   :  { %s245_s30 = scalar_lea.hbm %s323_s4, 128 }
 0x1c0   :  { %p246_p5 = scmp.ne.s32.totalorder %s323_s4, %s245_s30  ;;  %p249_p6 = scmp.lt.u32.totalorder %s245_s30, %s323_s4 }
 0x1c2   :  { %p251_p7 = pnand %p249_p6, %p246_p5 }
 0x1c4   :  { %254 = shalt.err (!%p251_p7)
}
 0x1c5   :  { %193 = dma.vmem_to_hbm [thread:$0]  %s191_s1, 128, %s323_s4, [#allocation5]  }
 0x1c6   :  { %255 = dma.done.wait [#allocation5], 128  }
 0x1c7   :  { %256 = vsyncadd [#allocation5], 4294967168 }
 0x1c8   :  { %197 = vsyncpa [#allocation5], 1 }

</bundles_post_ra>
